<compile_context>
chip_gen: v7x
topology: tpu7x:2x2x1
jax: 0.10.0
libtpu: 0.0.40
codegen_flags: <defaults>
</compile_context>

<pallas_src>
import math

import jax
import jax.numpy as jnp
from jax.experimental import pallas as pl
from jax.experimental.pallas import tpu as pltpu


_VMEM_BUDGET = 28 * 1024 * 1024   # residency decision budget: fits v7x's 32 MiB scoped window
_VMEM_LIMIT = 32 * 1024 * 1024    # explicit scoped-VMEM request (<= v7x default, > v5e default)


def _gelu_tanh(x):
    # TODO(synk): PyTorch nn.GELU() default is the exact erf form; the tanh approximation
    # (== jax.nn.gelu(approximate=True)) is used for its guaranteed EUP lowering (~1e-3 dev).
    c = math.sqrt(2.0 / math.pi)
    return 0.5 * x * (1.0 + jnp.tanh(c * (x + 0.044715 * x * x * x)))


# ---------------------------------------------------------------------------
# Fused FFN kernel.  grid = (row tiles, hidden tiles); hidden axis is the
# reduction of the 2nd matmul and is accumulated in an f32 VMEM scratch.
# ---------------------------------------------------------------------------
def _ffn_kernel(x_ref, w1_ref, b1_ref, w2_ref, b2_ref, o_ref, acc_ref):
    h = pl.program_id(1)

    # (tm, D) @ (D, th) -> (tm, th), bf16 operands, f32 accumulation on the MXU.
    a = jnp.dot(x_ref[...], w1_ref[...], preferred_element_type=jnp.float32)
    a = _gelu_tanh(a + b1_ref[...])          # bias broadcast + GELU in f32
    # TODO(synk): nn.Dropout is identity in eval mode; training-mode dropout would use
    # pltpu.prng_seed + pltpu.stateful_bernoulli on `a` here.

    # (tm, th) @ (th, D) partial product for this hidden tile.
    part = jnp.dot(a.astype(w2_ref.dtype), w2_ref[...],
                   preferred_element_type=jnp.float32)

    @pl.when(h == 0)
    def _():                                  # first hidden tile: write directly (no zero pass)
        acc_ref[...] = part

    @pl.when(h != 0)
    def _():
        acc_ref[...] += part

    @pl.when(h == pl.num_programs(1) - 1)
    def _():
        o_ref[...] = (acc_ref[...] + b2_ref[...]).astype(o_ref.dtype)


def _pick_row_tile(M):
    cands = (512, 256, 128, 64, 32, 16, 8)
    # Prefer >= 2 row tiles so the "parallel" m axis can shard across v7x's 2 TensorCores.
    for t in cands:
        if M % t == 0 and M // t >= 2:
            return t
    for t in cands:
        if M % t == 0:
            return t
    raise ValueError(f"rows (B*S = {M}) must be a multiple of 8")


def _pick_hidden_tile(H, D, tm, w_itemsize):
    # Fully VMEM-resident weights when they fit the budget: weight HBM traffic drops
    # from (M/tm)x to 1x.  Double-buffering counted conservatively.
    resident = 2 * (2 * D * H * w_itemsize)               # W1 + W2, x2 buffers
    tiles = (2 * tm * D * w_itemsize                      # x tiles (double-buffered)
             + 2 * tm * D * 4                             # out tiles (f32 upper bound)
             + tm * D * 4                                 # f32 accumulator scratch
             + tm * H * 4)                                # f32 hidden activation temporary
    if resident + tiles <= _VMEM_BUDGET:
        return H
    for t in (512, 256, 128):                             # multiples of 256 preferred (MXU width)
        if H % t == 0:
            return t
    raise ValueError(f"hidden dim {H} must be a multiple of 128")


def feed_forward(x, params, *, compute_dtype=jnp.bfloat16, tm=None, th=None):
    """x: (B, S, D); params: w1 (D, H), b1 (1, H), w2 (H, D), b2 (1, D) with H = 4*D."""
    B, S, D = x.shape
    H = params["w1"].shape[1]
    M = B * S
    assert D % 128 == 0 and H % 128 == 0, "d_model / hidden must be lane-aligned (x128)"

    # bf16 operands -> MXU peak + halved weight HBM stream; f32 accumulation in kernel.
    x2 = x.reshape(M, D).astype(compute_dtype)            # trivial reshape, no data movement
    w1 = params["w1"].astype(compute_dtype)
    w2 = params["w2"].astype(compute_dtype)
    b1 = params["b1"].astype(jnp.float32)
    b2 = params["b2"].astype(jnp.float32)

    if tm is None:
        tm = _pick_row_tile(M)
    if th is None:
        th = _pick_hidden_tile(H, D, tm, jnp.dtype(compute_dtype).itemsize)
    assert M % tm == 0 and H % th == 0 and tm % 8 == 0 and th % 128 == 0

    grid = (M // tm, H // th)                              # reduction (hidden) axis last

    out = pl.pallas_call(
        _ffn_kernel,
        out_shape=jax.ShapeDtypeStruct((M, D), x.dtype),
        grid_spec=pltpu.PrefetchScalarGridSpec(
            num_scalar_prefetch=0,
            grid=grid,
            in_specs=[
                pl.BlockSpec((tm, D), lambda m, h: (m, 0)),    # x row tile
                pl.BlockSpec((D, th), lambda m, h: (0, h)),    # W1 (resident when th == H)
                pl.BlockSpec((1, th), lambda m, h: (0, h)),    # b1 tile
                pl.BlockSpec((th, D), lambda m, h: (h, 0)),    # W2 (resident when th == H)
                pl.BlockSpec((1, D), lambda m, h: (0, 0)),     # b2 (resident)
            ],
            out_specs=pl.BlockSpec((tm, D), lambda m, h: (m, 0)),
            scratch_shapes=[pltpu.VMEM((tm, D), jnp.float32)],
        ),
        compiler_params=pltpu.CompilerParams(
            dimension_semantics=("parallel", "arbitrary"),
            vmem_limit_bytes=_VMEM_LIMIT,
        ),
    )(x2, w1, b1, w2, b2)
    return out.reshape(B, S, D)


# ---------------------------------------------------------------------------
# Pure-JAX reference (module semantics in f32; eval-mode dropout = identity).
# Kernel runs matmuls in bf16 -> tolerance loosened accordingly.
# ---------------------------------------------------------------------------
def reference(x, params):
    hp = jax.lax.Precision.HIGHEST
    y = jnp.dot(x, params["w1"], precision=hp) + params["b1"]
    y = jax.nn.gelu(y, approximate=True)
    return jnp.dot(y, params["w2"], precision=hp) + params["b2"]


if __name__ == "__main__":
    B, S, d_model = 2, 16, 128       # lane-dense d_model; hidden = 4*d_model = 512
    hidden = 4 * d_model

    key0 = jax.random.PRNGKey(0)
    kx, kw1, kb1, kw2, kb2 = jax.random.split(key0, 5)

    x = jax.random.normal(kx, (B, S, d_model), dtype=jnp.float32)
    params = {
        "w1": jax.random.normal(kw1, (d_model, hidden), jnp.float32) / math.sqrt(d_model),
        "b1": jax.random.normal(kb1, (1, hidden), jnp.float32) * 0.02,
        "w2": jax.random.normal(kw2, (hidden, d_model), jnp.float32) / math.sqrt(hidden),
        "b2": jax.random.normal(kb2, (1, d_model), jnp.float32) * 0.02,
    }

    out = feed_forward(x, params)
    out = jax.block_until_ready(out)

    ref = reference(x, params)
    assert out.shape == (B, S, d_model)
    # bf16 matmul operands vs f32 reference -> a few e-3 typical error, <= ~1.5e-2 worst case.
    assert jnp.allclose(out, ref, atol=3e-2, rtol=3e-2), (
        float(jnp.max(jnp.abs(out - ref)))
    )

    print("KERNEL_OK")
</pallas_src>

<mosaic_0001>
module attributes {stable_mosaic.version = 11 : i64} {
  func.func @_ffn_kernel(%arg0: i32, %arg1: i32, %arg2: memref<16x128xbf16, #tpu.memory_space<vmem>>, %arg3: memref<128x512xbf16, #tpu.memory_space<vmem>>, %arg4: memref<1x512xf32, #tpu.memory_space<vmem>>, %arg5: memref<512x128xbf16, #tpu.memory_space<vmem>>, %arg6: memref<1x128xf32, #tpu.memory_space<vmem>>, %arg7: memref<16x128xf32, #tpu.memory_space<vmem>>, %arg8: memref<16x128xf32, #tpu.memory_space<vmem>>) attributes {dimension_semantics = [#tpu.dimension_semantics<parallel>, #tpu.dimension_semantics<arbitrary>], iteration_bounds = array<i64: 2, 1>, scalar_prefetch = 0 : i64, scratch_operands = 1 : i64, tpu.core_type = #tpu.core_type<tc>, window_params = [{transform_indices = @transform_0, window_bounds = array<i64: 16, 128>}, {transform_indices = @transform_1, window_bounds = array<i64: 128, 512>}, {transform_indices = @transform_2, window_bounds = array<i64: 1, 512>}, {transform_indices = @transform_3, window_bounds = array<i64: 512, 128>}, {pipeline_mode = #tpu.pipeline_mode<synchronous>, transform_indices = @transform_4, window_bounds = array<i64: 1, 128>}, {transform_indices = @transform_5, window_bounds = array<i64: 16, 128>}]} {
    %c0 = arith.constant 0 : index
    %c0_0 = arith.constant 0 : index
    %0 = vector.load %arg2[%c0, %c0_0] : memref<16x128xbf16, #tpu.memory_space<vmem>>, vector<16x128xbf16>
    %c0_1 = arith.constant 0 : index
    %c0_2 = arith.constant 0 : index
    %1 = vector.load %arg3[%c0_1, %c0_2] : memref<128x512xbf16, #tpu.memory_space<vmem>>, vector<128x512xbf16>
    %cst = arith.constant dense<0.000000e+00> : vector<16x512xf32>
    %2 = tpu.matmul %0, %1, %cst {dimension_numbers = #tpu.dot_dimension_numbers<[1], [0], [0], [1], [0, 0, 1, 1], [], []>} : vector<16x128xbf16>, vector<128x512xbf16>, vector<16x512xf32> -> vector<16x512xf32>
    %c0_3 = arith.constant 0 : index
    %c0_4 = arith.constant 0 : index
    %3 = vector.load %arg4[%c0_3, %c0_4] : memref<1x512xf32, #tpu.memory_space<vmem>>, vector<1x512xf32>
    %4 = vector.broadcast %3 : vector<1x512xf32> to vector<16x512xf32>
    %5 = arith.addf %2, %4 : vector<16x512xf32>
    %cst_5 = arith.constant 5.000000e-01 : f32
    %6 = vector.broadcast %cst_5 : f32 to vector<16x512xf32>
    %7 = arith.mulf %6, %5 : vector<16x512xf32>
    %cst_6 = arith.constant 4.471500e-02 : f32
    %8 = vector.broadcast %cst_6 : f32 to vector<16x512xf32>
    %9 = arith.mulf %8, %5 : vector<16x512xf32>
    %10 = arith.mulf %9, %5 : vector<16x512xf32>
    %11 = arith.mulf %10, %5 : vector<16x512xf32>
    %12 = arith.addf %5, %11 : vector<16x512xf32>
    %cst_7 = arith.constant 0.797884583 : f32
    %13 = vector.broadcast %cst_7 : f32 to vector<16x512xf32>
    %14 = arith.mulf %13, %12 : vector<16x512xf32>
    %15 = math.tanh %14 : vector<16x512xf32>
    %cst_8 = arith.constant 1.000000e+00 : f32
    %16 = vector.broadcast %cst_8 : f32 to vector<16x512xf32>
    %17 = arith.addf %16, %15 : vector<16x512xf32>
    %18 = arith.mulf %7, %17 : vector<16x512xf32>
    %19 = arith.truncf %18 : vector<16x512xf32> to vector<16x512xbf16>
    %c0_9 = arith.constant 0 : index
    %c0_10 = arith.constant 0 : index
    %20 = vector.load %arg5[%c0_9, %c0_10] : memref<512x128xbf16, #tpu.memory_space<vmem>>, vector<512x128xbf16>
    %cst_11 = arith.constant dense<0.000000e+00> : vector<16x128xf32>
    %21 = tpu.matmul %19, %20, %cst_11 {dimension_numbers = #tpu.dot_dimension_numbers<[1], [0], [0], [1], [0, 0, 1, 1], [], []>} : vector<16x512xbf16>, vector<512x128xbf16>, vector<16x128xf32> -> vector<16x128xf32>
    %c0_i32 = arith.constant 0 : i32
    %22 = arith.cmpi eq, %arg1, %c0_i32 : i32
    %23 = arith.extui %22 : i1 to i32
    %c0_i32_12 = arith.constant 0 : i32
    %24 = arith.cmpi ne, %23, %c0_i32_12 : i32
    scf.if %24 {
      %c0_17 = arith.constant 0 : index
      %c0_18 = arith.constant 0 : index
      %31 = vector.load %arg8[%c0_17, %c0_18] : memref<16x128xf32, #tpu.memory_space<vmem>>, vector<16x128xf32>
      tpu.vector_store %arg8[%c0_17, %c0_18], %21 {strides = array<i32>} : memref<16x128xf32, #tpu.memory_space<vmem>>, vector<16x128xf32>,
    } else {
    }
    %c0_i32_13 = arith.constant 0 : i32
    %25 = arith.cmpi ne, %arg1, %c0_i32_13 : i32
    %26 = arith.extui %25 : i1 to i32
    %c0_i32_14 = arith.constant 0 : i32
    %27 = arith.cmpi ne, %26, %c0_i32_14 : i32
    scf.if %27 {
      %c0_17 = arith.constant 0 : index
      %c0_18 = arith.constant 0 : index
      %31 = vector.load %arg8[%c0_17, %c0_18] : memref<16x128xf32, #tpu.memory_space<vmem>>, vector<16x128xf32>
      %32 = arith.addf %31, %21 : vector<16x128xf32>
      %c0_19 = arith.constant 0 : index
      %c0_20 = arith.constant 0 : index
      %33 = vector.load %arg8[%c0_19, %c0_20] : memref<16x128xf32, #tpu.memory_space<vmem>>, vector<16x128xf32>
      tpu.vector_store %arg8[%c0_19, %c0_20], %32 {strides = array<i32>} : memref<16x128xf32, #tpu.memory_space<vmem>>, vector<16x128xf32>,
    } else {
    }
    %c0_i32_15 = arith.constant 0 : i32
    %28 = arith.cmpi eq, %arg1, %c0_i32_15 : i32
    %29 = arith.extui %28 : i1 to i32
    %c0_i32_16 = arith.constant 0 : i32
    %30 = arith.cmpi ne, %29, %c0_i32_16 : i32
    scf.if %30 {
      %c0_17 = arith.constant 0 : index
      %c0_18 = arith.constant 0 : index
      %31 = vector.load %arg8[%c0_17, %c0_18] : memref<16x128xf32, #tpu.memory_space<vmem>>, vector<16x128xf32>
      %c0_19 = arith.constant 0 : index
      %c0_20 = arith.constant 0 : index
      %32 = vector.load %arg6[%c0_19, %c0_20] : memref<1x128xf32, #tpu.memory_space<vmem>>, vector<1x128xf32>
      %33 = vector.broadcast %32 : vector<1x128xf32> to vector<16x128xf32>
      %34 = arith.addf %31, %33 : vector<16x128xf32>
      %c0_21 = arith.constant 0 : index
      %c0_22 = arith.constant 0 : index
      %35 = vector.load %arg7[%c0_21, %c0_22] : memref<16x128xf32, #tpu.memory_space<vmem>>, vector<16x128xf32>
      tpu.vector_store %arg7[%c0_21, %c0_22], %34 {strides = array<i32>} : memref<16x128xf32, #tpu.memory_space<vmem>>, vector<16x128xf32>,
    } else {
    }
    return
  }
  func.func @transform_0(%arg0: i32, %arg1: i32) -> (i32, i32) {
    %c0_i32 = arith.constant 0 : i32
    %c0_i32_0 = arith.constant 0 : i32
    return %arg0, %c0_i32 : i32, i32
  }
  func.func @transform_1(%arg0: i32, %arg1: i32) -> (i32, i32) {
    %c0_i32 = arith.constant 0 : i32
    %c0_i32_0 = arith.constant 0 : i32
    return %c0_i32, %arg1 : i32, i32
  }
  func.func @transform_2(%arg0: i32, %arg1: i32) -> (i32, i32) {
    %c0_i32 = arith.constant 0 : i32
    %c0_i32_0 = arith.constant 0 : i32
    return %c0_i32, %arg1 : i32, i32
  }
  func.func @transform_3(%arg0: i32, %arg1: i32) -> (i32, i32) {
    %c0_i32 = arith.constant 0 : i32
    %c0_i32_0 = arith.constant 0 : i32
    return %arg1, %c0_i32 : i32, i32
  }
  func.func @transform_4(%arg0: i32, %arg1: i32) -> (i32, i32) {
    %c0_i32 = arith.constant 0 : i32
    %c0_i32_0 = arith.constant 0 : i32
    %c0_i32_1 = arith.constant 0 : i32
    return %c0_i32, %c0_i32_0 : i32, i32
  }
  func.func @transform_5(%arg0: i32, %arg1: i32) -> (i32, i32) {
    %c0_i32 = arith.constant 0 : i32
    %c0_i32_0 = arith.constant 0 : i32
    return %arg0, %c0_i32 : i32, i32
  }
}

</mosaic_0001>

<bundles_post_ra>
// kernel: tpu_custom_call.1
= control target key start
LH: loop header
LB: loop body
LE: loop exit
PB: predicated region body
PF: predicated region fallthrough
CT: control target
= control target key end

     0   :  { %10 = vsyncpa [#allocation4], 0  ;;  %s2055_s0 = inlined_call_operand.hbm [shape: bf16[32,128], index: 0, kind: input, shape index: {}]   ;;  %s2056_s1 = inlined_call_operand.hbm [shape: bf16[128,512], index: 1, kind: input, shape index: {}]   ;;  %s2057_s2 = inlined_call_operand.vmem [shape: f32[1,512], index: 2, kind: input, shape index: {}]   ;;  %s2058_s3 = inlined_call_operand.hbm [shape: bf16[512,128], index: 3, kind: input, shape index: {}]   ;;  %s2059_s4 = inlined_call_operand.vmem [shape: f32[1,128], index: 4, kind: input, shape index: {}]   ;;  %s2060_s5 = inlined_call_operand.hbm [shape: f32[32,128], index: 5, kind: output, shape index: {}]  }
   0x1   :  { %12 = vsyncpa [#allocation4 + $0x1], 0 }
   0x2   :  { %13 = vsyncpa [#allocation7], 0 }
   0x3   :  { %14 = vsyncpa [#allocation5], 0 }
   0x4   :  { %16 = vsyncpa [#allocation5 + $0x1], 0  ;;  %s1742_s18 = smov 0   ;;  %s1744_s19 = smov 0  }
   0x5   :  { %s1746_s20 = smov 0   ;;  %s1748_s21 = smov 0  }
   0x6   :  { %s1750_s22 = smov 0   ;;  %s1752_s23 = smov 0  }
   0x7 LB: > { %s1208_s24 = sadd.s32 4294967295, %s1699_s23   ;;  %s1209_s25 = sadd.s32 4294967294, %s1699_s23   ;;  %s1699_s23 = sphi %s1752_s23, %s22_s23   ;;  %s1695_s22 = sphi %s1750_s22, %s2084_s22   ;;  %s1691_s21 = sphi %s1748_s21, %s2083_s21   ;;  %s1687_s20 = sphi %s1746_s20, %s2082_s20   ;;  %s1683_s19 = sphi %s1744_s19, %s2081_s19   ;;  %s1679_s18 = sphi %s1742_s18, %s2080_s18  }
   0x8   : > { %p54_p0 = scmp.ne.s32.totalorder %s1683_s19, %s1679_s18  ;;  %p1776_p1 = scmp.eq.s32.totalorder %s1208_s24, 0 }
   0x9   : > { %p1780_p2 = scmp.eq.s32.totalorder %s1208_s24, 1  ;;  %p183_p3 = scmp.eq.s32.totalorder %s1209_s25, 1 }
   0xa   : > { %s2066_s26 = scalar_select %p1776_p1, 1, 0 }
   0xb   : > { %p1786_p4 = por %p1776_p1, %p54_p0  ;;  %p1210_p5 = scmp.ge.s32.totalorder %s1699_s23, 1 }
   0xc   : > { %p1791_p6 = por %p183_p3, %p54_p0  ;;  %p190_p7 = scmp.lt.s32.totalorder %s1699_s23, 3 }
   0xd   : > { %s2068_s28 = scalar_select %p1786_p4, 1, 0 }
   0xe   : > { %s2069_s29 = scalar_select %p1791_p6, 1, 0 }
   0xf   : > { %p1796_p8 = pnand %p1210_p5, %p190_p7  ;;  %s1701_s6 = smov [#allocation6]  }
  0x10   : > { %s205_s7 = sshll.u32 %s1701_s6, 4  ;;  %s1702_s9 = smov [#allocation8]   ;;  %s1800_s7 = int_to_ptr.vmem [resolvable:$true] %s205_s7 }
  0x11   : > { %p1352_p9 = pneg %p1796_p8  ;;  %s229_s10 = sshll.u32 %s1702_s9, 4  ;;  %s1811_s10 = int_to_ptr.vmem [resolvable:$true] %s229_s10 }
  0x12   : > { %s1527_s13 = scalar_lea.hbm %s2056_s1, 4096 }
  0x13   : > { %p1807_p11 = pnand %p1352_p9, %p1776_p1  ;;  %p1528_p12 = scmp.ne.s32.totalorder %s2056_s1, %s1527_s13 }
  0x14   : > { %p1534_p5 = scmp.lt.u32.totalorder %s1527_s13, %s2056_s1 }
  0x15   : > { %p1529_p13 = pneg %p1807_p11 }
  0x17   : > { %p1530_p0 = pnand %p1529_p13, %p1528_p12 }
  0x19   : > { %p1531_p3 = pneg %p1530_p0 }
  0x1b   : > { %p1536_p7 = pnand %p1534_p5, %p1531_p3 }
  0x1d   : > { %1539 = shalt.err (!%p1536_p7)
}
  0x1e   : > { %s1540_s24 = scalar_lea.vmem %s1800_s7, 4096  ;;  %p1548_p1 = scmp.lt.s32.totalorder %s1800_s7, %s1800_s7 }
  0x1f   : > { %p1541_p9 = scmp.ne.s32.totalorder %s1800_s7, %s1540_s24  ;;  %p1549_p12 = scmp.lt.s32.totalorder %s1540_s24, %s1540_s24 }
  0x21   : > { %p1543_p10 = pnand %p1541_p9, %p1529_p13  ;;  %p1550_p0 = por %p1549_p12, %p1548_p1 }
  0x23   : > { %p1544_p6 = pneg %p1543_p10 }
  0x25   : > { %p1551_p4 = pnand %p1550_p0, %p1544_p6 }
  0x27   : > { %1554 = shalt.err (!%p1551_p4)
}
  0x28   : > { %s1703_s25 = smov 256   ;;  %s1704_s6 = smov 16  }
  0x29   : > { %1355 = dma.hbm_to_vmem [thread:$0]  (!%p1807_p11), %s2056_s1, 4096, %s1800_s7, [#allocation7], %s1703_s25, %s1703_s25, %s1704_s6  }
  0x2a   : > { %s1555_s14 = scalar_lea.hbm %s2058_s3, 4096 }
  0x2b   : > { %p1556_p1 = scmp.ne.s32.totalorder %s2058_s3, %s1555_s14  ;;  %p1562_p10 = scmp.lt.u32.totalorder %s1555_s14, %s2058_s3 }
  0x2d   : > { %p1558_p4 = pnand %p1556_p1, %p1529_p13 }
  0x2f   : > { %p1559_p6 = pneg %p1558_p4 }
  0x31   : > { %p1564_p3 = pnand %p1562_p10, %p1559_p6 }
  0x33   : > { %1567 = shalt.err (!%p1564_p3)
}
  0x34   : > { %s1568_s7 = scalar_lea.vmem %s1811_s10, 4096  ;;  %p1576_p12 = scmp.lt.s32.totalorder %s1811_s10, %s1811_s10 }
  0x35   : > { %p1569_p5 = scmp.ne.s32.totalorder %s1811_s10, %s1568_s7  ;;  %p1577_p0 = scmp.lt.s32.totalorder %s1568_s7, %s1568_s7 }
  0x37   : > { %p1571_p7 = pnand %p1569_p5, %p1529_p13  ;;  %p1578_p1 = por %p1577_p0, %p1576_p12 }
  0x39   : > { %p1572_p9 = pneg %p1571_p7 }
  0x3b   : > { %p1579_p4 = pnand %p1578_p1, %p1572_p9 }
  0x3d   : > { %1582 = shalt.err (!%p1579_p4)
}
  0x3e   : > { %s2064_s25 = smov 64   ;;  %s1706_s6 = smov 4  }
  0x3f   : > { %1358 = dma.hbm_to_vmem [thread:$0]  (!%p1807_p11), %s2058_s3, 4096, %s1811_s10, [#allocation7], %s2064_s25, %s2064_s25, %s1706_s6  }
  0x40   : > { %s34_s12 = sadd.s32 1, %s1695_s22  ;;  %s41_s13 = sadd.s32 1, %s1687_s20 }
  0x41   : > { %p36_p13 = scmp.ge.s32.totalorder %s34_s12, 2  ;;  %p48_p6 = scmp.ne.s32.totalorder %s1687_s20, %s1683_s19 }
  0x42   : > { %p49_p10 = scmp.eq.s32.totalorder %s1699_s23, 0  ;;  %p1369_p3 = scmp.lt.s32.totalorder %s1699_s23, 2 }
  0x43   : > { %s2086_s12 = smov (%p36_p13, %s34_s12), 0  ;;  %p1878_p7 = por %p1780_p2, %p48_p6 }
  0x44   : > { %p50_p5 = por %p49_p10, %p48_p6  ;;  %s38_s14 = ssub.s32 %s1695_s22, %s2086_s12 }
  0x45   : > { %s2072_s8 = scalar_select %p1878_p7, 1, 0 }
  0x46   : > { %s246_s15 = sand.u32 1, %s1687_s20   ;;  %p39_p9 = scmp.eq.s32.totalorder %s38_s14, 0 }
  0x47   : > { %s1215_s10 = sshll.u32 %s246_s15, 3  ;;  %s1294_s16 = sshll.u32 %s1695_s22, 7 }
  0x48   : > { %s1887_s17 = scalar_select %p39_p9, %s1687_s20, %s41_s13  }
  0x49   : > { %s1892_s9 = scalar_lea.hbm %s2055_s0, %s1294_s16  ;;  %s250_s27 = scalar_lea.vmem [#allocation3], %s1215_s10 }
  0x4a   : > { %s257_s11 = sshll.u32 %s250_s27, 4  ;;  %p1896_p2 = pnand %p1369_p3, %p50_p5  ;;  %s1900_s11 = int_to_ptr.vmem [resolvable:$true] %s257_s11 }
  0x4b   : > { %s1902_s13 = scalar_lea.sflag [#allocation4], %s246_s15  ;;  %s1583_s14 = scalar_lea.hbm %s1892_s9, 128 }
  0x4c   : > { %p1584_p11 = scmp.ne.s32.totalorder %s1892_s9, %s1583_s14  ;;  %p1585_p12 = pneg %p1896_p2 }
  0x4d   : > { %s1588_s24 = scalar_lea.hbm %s2055_s0, 256  ;;  %p1589_p4 = scmp.lt.u32.totalorder %s1892_s9, %s2055_s0 }
  0x4e   : > { %p1586_p0 = pnand %p1585_p12, %p1584_p11  ;;  %p1590_p13 = scmp.lt.u32.totalorder %s1588_s24, %s1583_s14 }
  0x4f   : > { %p1592_p10 = scmp.lt.u32.totalorder %s1583_s14, %s1892_s9 }
  0x50   : > { %p1587_p1 = pneg %p1586_p0  ;;  %p1591_p6 = por %p1590_p13, %p1589_p4 }
  0x52   : > { %p1593_p3 = por %p1592_p10, %p1591_p6 }
  0x54   : > { %p1594_p5 = pnand %p1593_p3, %p1587_p1 }
  0x56   : > { %1597 = shalt.err (!%p1594_p5)
}
  0x57   : > { %s1598_s15 = scalar_lea.vmem %s1900_s11, 128  ;;  %s1707_s10 = smov [#allocation3]  }
  0x58   : > { %p1599_p9 = scmp.ne.s32.totalorder %s1900_s11, %s1598_s15  ;;  %s1603_s16 = sshll.u32 %s1707_s10, 4  ;;  %s1604_s16 = int_to_ptr.vmem [resolvable:$false] %s1603_s16 }
  0x59   : > { %s1605_s7 = scalar_lea.vmem %s1604_s16, 256  ;;  %p1606_p7 = scmp.lt.s32.totalorder %s1900_s11, %s1604_s16 }
  0x5a   : > { %p1601_p11 = pnand %p1599_p9, %p1585_p12  ;;  %p1607_p4 = scmp.lt.s32.totalorder %s1605_s7, %s1598_s15 }
  0x5c   : > { %p1602_p0 = pneg %p1601_p11  ;;  %p1608_p13 = por %p1607_p4, %p1606_p7 }
  0x5e   : > { %p1609_p6 = pnand %p1608_p13, %p1602_p0 }
  0x60   : > { %1612 = shalt.err (!%p1609_p6)
}
  0x61   : > { %s2074_s14 = smov 64   ;;  %269 = sbr.rel (%p1796_p8) target bundleno = 627 (0x273), region = 40 }
  0x62   : > { %1362 = dma.hbm_to_vmem [thread:$0]  (!%p1896_p2), %s1892_s9, 128, %s1900_s11, %s1902_s13, %s2074_s14, %s2074_s14, %s1706_s6  }
  0x63   : > { %s1936_s24 = sand.u32 (!%p1796_p8), 1, %s1683_s19   ;;  %p2075_p7 = scmp.ne.s32.totalorder (!%p1796_p8), %s2068_s28, 0 }
  0x64   : > { %s1219_s27 = sshll.u32 (!%p1796_p8), %s1936_s24, 3  ;;  %s272_s15 = scalar_lea.sflag (!%p1796_p8), [#allocation4], %s1936_s24 }
  0x65   : > { %s1940_s10 = scalar_lea.vmem (!%p1796_p8), [#allocation3], %s1219_s27 }
  0x68   : > { %1666 = dma.done.wait (%p2075_p7), %s272_s15, 128  }
  0x69   : > { %1668 = vsyncadd (%p2075_p7), %s272_s15, 4294967168  ;;  %p2076_p2 = scmp.ne.s32.totalorder %s2066_s26, 0 }
  0x6b   : > { %1670 = dma.done.wait (%p2076_p2), [#allocation7], 8192  }
  0x6c   : > { %1672 = vsyncadd (%p2076_p2), [#allocation7], 4294959104  ;;  %v1708_v0 = vmov 0   ;;  %v1430_v1 = vld [vmem:[#allocation6 + $0x4] ss:$16 sps:$4 sm:$0xff]   ;;  %v1483_v38 = vld [vmem:[#allocation8 + $0x48] sm:$0xff]  }
  0x6d   : > { %578 = vmatprep.mubr.bf16.mxu0 %v1708_v0  ;;  %621 = vmatprep.mubr.bf16.mxu1 %v1708_v0  ;;  %v1432_v2 = vld [vmem:[#allocation6 + $0xc] ss:$16 sps:$4 sm:$0xff]   ;;  %v1434_v3 = vld [vmem:[#allocation6] ss:$16 sps:$4 sm:$0xff]   ;;  %v1435_v4 = vld [vmem:[#allocation6 + $0x8] ss:$16 sps:$4 sm:$0xff]  }
  0x6e   : > { %546 = vmatprep.subr.bf16.mxu0 %v1430_v1  ;;  %589 = vmatprep.subr.bf16.mxu1 %v1432_v2  ;;  %v1436_v5 = vld [vmem:[#allocation6 + $0x24] ss:$16 sps:$4 sm:$0xff]   ;;  %v1438_v6 = vld [vmem:[#allocation6 + $0x2c] ss:$16 sps:$4 sm:$0xff]   ;;  %v1440_v7 = vld [vmem:[#allocation6 + $0x20] ss:$16 sps:$4 sm:$0xff]   ;;  %v360_v2 = vlaneseq }
  0x6f   : > { %547 = vmatpush1.bf16.msra.mxu0 %v1434_v3  ;;  %590 = vmatpush1.bf16.msra.mxu1 %v1435_v4  ;;  %v1441_v8 = vld [vmem:[#allocation6 + $0x28] ss:$16 sps:$4 sm:$0xff]   ;;  %v1442_v9 = vld [vmem:[#allocation6 + $0x44] ss:$16 sps:$4 sm:$0xff]   ;;  %v1444_v10 = vld [vmem:[#allocation6 + $0x4c] ss:$16 sps:$4 sm:$0xff]  }
  0x70   : > { %548 = vmatprep.subr.bf16.mxu0 %v1436_v5  ;;  %591 = vmatprep.subr.bf16.mxu1 %v1438_v6  ;;  %v1446_v11 = vld [vmem:[#allocation6 + $0x40] ss:$16 sps:$4 sm:$0xff]   ;;  %v1447_v12 = vld [vmem:[#allocation6 + $0x48] ss:$16 sps:$4 sm:$0xff]   ;;  %v1448_v13 = vld [vmem:[#allocation6 + $0x64] ss:$16 sps:$4 sm:$0xff]  }
  0x71   : > { %v1450_v14 = vld [vmem:[#allocation6 + $0x6c] ss:$16 sps:$4 sm:$0xff]   ;;  %v1452_v15 = vld [vmem:[#allocation6 + $0x60] ss:$16 sps:$4 sm:$0xff]   ;;  %v1453_v16 = vld [vmem:[#allocation6 + $0x68] ss:$16 sps:$4 sm:$0xff]  }
  0x72   : > { %v1454_v17 = vld [vmem:[#allocation6 + $0x84] ss:$16 sps:$4 sm:$0xff]   ;;  %v1456_v18 = vld [vmem:[#allocation6 + $0x8c] ss:$16 sps:$4 sm:$0xff]   ;;  %v1458_v19 = vld [vmem:[#allocation6 + $0x80] ss:$16 sps:$4 sm:$0xff]  }
  0x73   : > { %549 = vmatpush1.bf16.msra.mxu0 %v1440_v7  ;;  %592 = vmatpush1.bf16.msra.mxu1 %v1441_v8  ;;  %v1459_v20 = vld [vmem:[#allocation6 + $0x88] ss:$16 sps:$4 sm:$0xff]   ;;  %v1460_v21 = vld [vmem:[#allocation6 + $0xa4] ss:$16 sps:$4 sm:$0xff]   ;;  %v1462_v22 = vld [vmem:[#allocation6 + $0xac] ss:$16 sps:$4 sm:$0xff]  }
  0x74   : > { %550 = vmatprep.subr.bf16.mxu0 %v1442_v9  ;;  %593 = vmatprep.subr.bf16.mxu1 %v1444_v10  ;;  %v1464_v23 = vld [vmem:[#allocation6 + $0xa0] ss:$16 sps:$4 sm:$0xff]   ;;  %v1465_v24 = vld [vmem:[#allocation6 + $0xa8] ss:$16 sps:$4 sm:$0xff]   ;;  %v1466_v25 = vld [vmem:[#allocation6 + $0xc4] ss:$16 sps:$4 sm:$0xff]  }
  0x75   : > { %v1468_v26 = vld [vmem:[#allocation6 + $0xcc] ss:$16 sps:$4 sm:$0xff]   ;;  %v1470_v27 = vld [vmem:[#allocation6 + $0xc0] ss:$16 sps:$4 sm:$0xff]   ;;  %v1471_v28 = vld [vmem:[#allocation6 + $0xc8] ss:$16 sps:$4 sm:$0xff]  }
  0x76   : > { %v1472_v29 = vld [vmem:[#allocation6 + $0xe4] ss:$16 sps:$4 sm:$0xff]   ;;  %v1474_v30 = vld [vmem:[#allocation6 + $0xec] ss:$16 sps:$4 sm:$0xff]   ;;  %v1476_v31 = vld [vmem:[#allocation6 + $0xe0] ss:$16 sps:$4 sm:$0xff]  }
  0x77   : > { %551 = vmatpush1.bf16.msra.mxu0 %v1446_v11  ;;  %594 = vmatpush1.bf16.msra.mxu1 %v1447_v12  ;;  %v1477_v32 = vld [vmem:[#allocation6 + $0xe8] ss:$16 sps:$4 sm:$0xff]   ;;  %v1479_v34 = vld [vmem:[#allocation8 + $0x40] sm:$0xff]   ;;  %v1487_v42 = vld [vmem:[#allocation8 + $0x50] sm:$0xff]   ;;  %v361_v3 = vshrl.u32 %v360_v2, 7  ;;  %s1222_s30 = sshll.u32 %s1936_s24, 4 }
  0x78   : > { %552 = vmatprep.subr.bf16.mxu0 %v1448_v13  ;;  %595 = vmatprep.subr.bf16.mxu1 %v1450_v14  ;;  %v1478_v33 = vld [vmem:[%s1940_s10] sm:$0xff]   ;;  %v1480_v35 = vld [vmem:[#allocation8 + $0xc0] sm:$0xff]   ;;  %v1484_v39 = vld [vmem:[#allocation8 + $0xc8] sm:$0xff]   ;;  %s313_s9 = scalar_lea.vmem [#allocation9], %s1222_s30  ;;  %s1295_s13 = sshll.u32 %s1691_s21, 8 }
  0x79   : > { %v1481_v36 = vld [vmem:[#allocation8] sm:$0xff]   ;;  %v1485_v40 = vld [vmem:[#allocation8 + $0x8] sm:$0xff]   ;;  %v1488_v43 = vld [vmem:[#allocation8 + $0xd0] sm:$0xff]   ;;  %v362_v4 = vsub.s32 0, %v361_v3  ;;  %v370_v5 = vsub.s32 2, %v361_v3  ;;  %v366_v7 = vsub.s32 1, %v361_v3  ;;  %s2006_s14 = scalar_lea.hbm %s2060_s5, %s1295_s13 }
  0x7a   : > { %v1482_v37 = vld [vmem:[#allocation8 + $0x80] sm:$0xff]   ;;  %v1486_v41 = vld [vmem:[#allocation8 + $0x88] sm:$0xff]   ;;  %v1489_v44 = vld [vmem:[#allocation8 + $0x10] sm:$0xff]   ;;  %v374_v8 = vsub.s32 3, %v361_v3  ;;  %s1092_s11 = sshll.u32 %s313_s9, 4  ;;  %s1079_s27 = scalar_lea.sflag [#allocation5], %s1936_s24  ;;  %s2001_s11 = int_to_ptr.vmem [resolvable:$true] %s1092_s11 }
  0x7b   : > { %553 = vmatpush1.bf16.msra.mxu0 %v1452_v15  ;;  %596 = vmatpush1.bf16.msra.mxu1 %v1453_v16  ;;  %v1490_v45 = vld [vmem:[#allocation8 + $0x90] sm:$0xff]   ;;  %v1491_v46 = vld [vmem:[#allocation8 + $0x58] sm:$0xff]   ;;  %v1495_v50 = vld [vmem:[#allocation8 + $0x60] sm:$0xff]   ;;  %s1613_s15 = scalar_lea.vmem %s2001_s11, 256  ;;  %p2077_p12 = scmp.ne.s32.totalorder %s2072_s8, 0 }
  0x7c   : > { %554 = vmatprep.subr.bf16.mxu0 %v1454_v17  ;;  %597 = vmatprep.subr.bf16.mxu1 %v1456_v18  ;;  %v1492_v47 = vld [vmem:[#allocation8 + $0xd8] sm:$0xff]   ;;  %v1496_v51 = vld [vmem:[#allocation8 + $0xe0] sm:$0xff]   ;;  %v1499_v54 = vld [vmem:[#allocation8 + $0x68] sm:$0xff]   ;;  %p1614_p8 = scmp.ne.s32.totalorder %s2001_s11, %s1613_s15  ;;  %s1709_s21 = smov [#allocation9]  }
  0x7d   : > { %v1493_v48 = vld [vmem:[#allocation8 + $0x18] sm:$0xff]   ;;  %v1497_v52 = vld [vmem:[#allocation8 + $0x20] sm:$0xff]   ;;  %v1500_v55 = vld [vmem:[#allocation8 + $0xe8] sm:$0xff]   ;;  %s1617_s10 = sshll.u32 %s1709_s21, 4  ;;  %s1618_s10 = int_to_ptr.vmem [resolvable:$false] %s1617_s10 }
  0x7e   : > { %v1494_v49 = vld [vmem:[#allocation8 + $0x98] sm:$0xff]   ;;  %v1498_v53 = vld [vmem:[#allocation8 + $0xa0] sm:$0xff]   ;;  %v1501_v56 = vld [vmem:[#allocation8 + $0x28] sm:$0xff]   ;;  %p1615_p1 = pnand %p1614_p8, %p2077_p12  ;;  %s1619_s26 = scalar_lea.vmem %s1618_s10, 512 }
  0x7f   : > { %555 = vmatpush1.bf16.msra.mxu0 %v1458_v19  ;;  %598 = vmatpush1.bf16.msra.mxu1 %v1459_v20  ;;  %v1502_v57 = vld [vmem:[#allocation8 + $0xa8] sm:$0xff]   ;;  %v1503_v58 = vld [vmem:[#allocation8 + $0x70] sm:$0xff]   ;;  %v1507_v62 = vld [vmem:[#allocation8 + $0x78] sm:$0xff]   ;;  %p1620_p3 = scmp.lt.s32.totalorder %s2001_s11, %s1618_s10  ;;  %p1621_p5 = scmp.lt.s32.totalorder %s1619_s26, %s1613_s15 }
  0x80   : > { %556 = vmatprep.subr.bf16.mxu0 %v1460_v21  ;;  %599 = vmatprep.subr.bf16.mxu1 %v1462_v22  ;;  %v1504_v59 = vld [vmem:[#allocation8 + $0xf0] sm:$0xff]   ;;  %v1508_v63 = vld [vmem:[#allocation8 + $0xf8] sm:$0xff]   ;;  %p1616_p10 = pneg %p1615_p1 }
  0x81   : > { %v1505_v60 = vld [vmem:[#allocation8 + $0x30] sm:$0xff]   ;;  %v1509_v0 = vld [vmem:[#allocation8 + $0x38] sm:$0xff]   ;;  %p1622_p9 = por %p1621_p5, %p1620_p3 }
  0x82   : > { %v1506_v61 = vld [vmem:[#allocation8 + $0xb0] sm:$0xff]   ;;  %v1510_v1 = vld [vmem:[#allocation8 + $0xb8] sm:$0xff]  }
  0x83   : > { %557 = vmatpush1.bf16.msra.mxu0 %v1464_v23  ;;  %600 = vmatpush1.bf16.msra.mxu1 %v1465_v24  ;;  %v358_v6 = vld [vmem:[%s2057_s2] sm:$0xf]  ;;  %p1623_p11 = pnand %p1622_p9, %p1616_p10 }
  0x84   : > { %558 = vmatprep.subr.bf16.mxu0 %v1466_v25  ;;  %601 = vmatprep.subr.bf16.mxu1 %v1468_v26  ;;  %v363_v9 = vrot.slane %v358_v6, %v362_v4  ;;  %v371_v10 = vrot.slane %v358_v6, %v370_v5  ;;  %v367_v11 = vrot.slane %v358_v6, %v366_v7 }
  0x85   : > { %v375_v12 = vrot.slane %v358_v6, %v374_v8 }
  0x87   : > { %559 = vmatpush1.bf16.msra.mxu0 %v1470_v27  ;;  %602 = vmatpush1.bf16.msra.mxu1 %v1471_v28 }
  0x88   : > { %560 = vmatprep.subr.bf16.mxu0 %v1472_v29  ;;  %603 = vmatprep.subr.bf16.mxu1 %v1474_v30 }
  0x8b   : > { %561 = vmatpush1.bf16.msra.mxu0 %v1476_v31  ;;  %604 = vmatpush1.bf16.msra.mxu1 %v1477_v32 }
  0x8c   : > { %1296 = vmatprep.subr.bf16.mxu0 %v1479_v34  ;;  %1318 = vmatprep.subr.bf16.mxu1 %v1480_v35 }
  0x8e   : > { %579 = vmatmul.mubr.bf16.vlgmr.msra.gmra.mrb[0].mxu0 %v1478_v33  ;;  %622 = vmatmul.mubr.bf16.vlgmr.msra.gmra.mrb[0].mxu1 %v1478_v33 }
  0x8f   : > { %1297 = vmatpush3.bf16.msra.mxu0 %v1481_v36  ;;  %1319 = vmatpush3.bf16.msra.mxu1 %v1482_v37 }
  0x90   : > { %1298 = vmatprep.subr.bf16.mxu0 %v1483_v38  ;;  %1320 = vmatprep.subr.bf16.mxu1 %v1484_v39 }
  0x93   : > { %1299 = vmatpush3.bf16.msra.mxu0 %v1485_v40  ;;  %1321 = vmatpush3.bf16.msra.mxu1 %v1486_v41 }
  0x94   : > { %1300 = vmatprep.subr.bf16.mxu0 %v1487_v42  ;;  %1322 = vmatprep.subr.bf16.mxu1 %v1488_v43 }
  0x97   : > { %1301 = vmatpush3.bf16.msra.mxu0 %v1489_v44  ;;  %1323 = vmatpush3.bf16.msra.mxu1 %v1490_v45 }
  0x98   : > { %1302 = vmatprep.subr.bf16.mxu0 %v1491_v46  ;;  %1324 = vmatprep.subr.bf16.mxu1 %v1492_v47 }
  0x9b   : > { %1303 = vmatpush3.bf16.msra.mxu0 %v1493_v48  ;;  %1325 = vmatpush3.bf16.msra.mxu1 %v1494_v49 }
  0x9c   : > { %1304 = vmatprep.subr.bf16.mxu0 %v1495_v50  ;;  %1326 = vmatprep.subr.bf16.mxu1 %v1496_v51 }
  0x9f   : > { %1305 = vmatpush3.bf16.msra.mxu0 %v1497_v52  ;;  %1327 = vmatpush3.bf16.msra.mxu1 %v1498_v53 }
  0xa0   : > { %1306 = vmatprep.subr.bf16.mxu0 %v1499_v54  ;;  %1328 = vmatprep.subr.bf16.mxu1 %v1500_v55 }
  0xa3   : > { %1307 = vmatpush3.bf16.msra.mxu0 %v1501_v56  ;;  %1329 = vmatpush3.bf16.msra.mxu1 %v1502_v57 }
  0xa4   : > { %1308 = vmatprep.subr.bf16.mxu0 %v1503_v58  ;;  %1330 = vmatprep.subr.bf16.mxu1 %v1504_v59 }
  0xa7   : > { %1309 = vmatpush3.bf16.msra.mxu0 %v1505_v60  ;;  %1331 = vmatpush3.bf16.msra.mxu1 %v1506_v61 }
  0xa8   : > { %1310 = vmatprep.subr.bf16.mxu0 %v1507_v62  ;;  %1332 = vmatprep.subr.bf16.mxu1 %v1508_v63 }
  0xab   : > { %1311 = vmatpush3.bf16.msra.mxu0 %v1509_v0  ;;  %1333 = vmatpush3.bf16.msra.mxu1 %v1510_v1 }
 0x161   : > { %v580_v13 = vpop.f32.mrb[0].mxu0  ;;  %v623_v14 = vpop.f32.mrb[0].mxu1 }
 0x162   : > { %v1954_v15 = vadd.f32 %v580_v13, %v363_v9  ;;  %v1956_v16 = vadd.f32 %v623_v14, %v371_v10  ;;  %v582_v17 = vpop.f32.mrb[1].mxu0  ;;  %v625_v18 = vpop.f32.mrb[1].mxu1 }
 0x163   : > { %v1958_v19 = vadd.f32 %v582_v17, %v367_v11  ;;  %v1960_v20 = vadd.f32 %v625_v18, %v375_v12  ;;  %v584_v21 = vpop.f32.mrb[2].mxu0  ;;  %v627_v22 = vpop.f32.mrb[2].mxu1 }
 0x164   : > { %v640_v23 = vmul.f32 0.044715, %v1954_v15  ;;  %v642_v24 = vmul.f32 0.044715, %v1956_v16  ;;  %v585_v25 = vadd.f32 %v584_v21, %v363_v9  ;;  %v628_v26 = vadd.f32 %v627_v22, %v371_v10  ;;  %v586_v27 = vpop.f32.mrb[3].mxu0  ;;  %v629_v28 = vpop.f32.mrb[3].mxu1 }
 0x165   : > { %v641_v29 = vmul.f32 0.044715, %v1958_v19  ;;  %v643_v30 = vmul.f32 0.044715, %v1960_v20  ;;  %v1966_v31 = vadd.f32 %v586_v27, %v367_v11  ;;  %v1968_v32 = vadd.f32 %v629_v28, %v375_v12 }
 0x166   : > { %v648_v33 = vmul.f32 %v640_v23, %v1954_v15  ;;  %v650_v34 = vmul.f32 %v642_v24, %v1956_v16  ;;  %v644_v35 = vmul.f32 0.044715, %v585_v25  ;;  %v646_v36 = vmul.f32 0.044715, %v628_v26 }
 0x167   : > { %v649_v37 = vmul.f32 %v641_v29, %v1958_v19  ;;  %v651_v38 = vmul.f32 %v643_v30, %v1960_v20  ;;  %v645_v39 = vmul.f32 0.044715, %v1966_v31  ;;  %v647_v40 = vmul.f32 0.044715, %v1968_v32 }
 0x168   : > { %v656_v41 = vmul.f32 %v648_v33, %v1954_v15  ;;  %v658_v42 = vmul.f32 %v650_v34, %v1956_v16  ;;  %v652_v43 = vmul.f32 %v644_v35, %v585_v25  ;;  %v654_v44 = vmul.f32 %v646_v36, %v628_v26 }
 0x169   : > { %v657_v45 = vmul.f32 %v649_v37, %v1958_v19  ;;  %v659_v46 = vmul.f32 %v651_v38, %v1960_v20  ;;  %v653_v47 = vmul.f32 %v645_v39, %v1966_v31  ;;  %v655_v48 = vmul.f32 %v647_v40, %v1968_v32 }
 0x16a   : > { %v664_v49 = vadd.f32 %v656_v41, %v1954_v15  ;;  %v666_v50 = vadd.f32 %v658_v42, %v1956_v16  ;;  %v660_v51 = vmul.f32 %v652_v43, %v585_v25  ;;  %v662_v52 = vmul.f32 %v654_v44, %v628_v26 }
 0x16b   : > { %v661_v53 = vmul.f32 %v653_v47, %v1966_v31  ;;  %v663_v54 = vmul.f32 %v655_v48, %v1968_v32  ;;  %v665_v59 = vadd.f32 %v657_v45, %v1958_v19  ;;  %v667_v63 = vadd.f32 %v659_v46, %v1960_v20 }
 0x16c   : > { %v672_v55 = vmul.f32 0.7978846, %v664_v49  ;;  %v674_v56 = vmul.f32 0.7978846, %v666_v50  ;;  %v668_v57 = vadd.f32 %v660_v51, %v585_v25  ;;  %v670_v58 = vadd.f32 %v662_v52, %v628_v26  ;;  %v1288_v51 = vld [vmem:[%s2059_s4] ss:$0 sm:$0xff] }
 0x16d   : > { %v669_v60 = vadd.f32 %v661_v53, %v1966_v31  ;;  %v673_v0 = vmul.f32 0.7978846, %v665_v59  ;;  %v671_v2 = vadd.f32 %v663_v54, %v1968_v32  ;;  %v675_v3 = vmul.f32 0.7978846, %v667_v63 }
 0x16e   : > { %1511 = vtanh.f32 %v672_v55  ;;  %v676_v61 = vmul.f32 0.7978846, %v668_v57  ;;  %v678_v62 = vmul.f32 0.7978846, %v670_v58  ;;  %v632_v11 = vmul.f32 0.5, %v1954_v15 }
 0x16f   : > { %1513 = vtanh.f32 %v674_v56  ;;  %v677_v1 = vmul.f32 0.7978846, %v669_v60  ;;  %v679_v4 = vmul.f32 0.7978846, %v671_v2  ;;  %v636_v12 = vmul.f32 0.5, %v585_v25 }
 0x170   : > { %1515 = vtanh.f32 %v676_v61  ;;  %v634_v17 = vmul.f32 0.5, %v1956_v16  ;;  %v638_v18 = vmul.f32 0.5, %v628_v26  ;;  %v633_v23 = vmul.f32 0.5, %v1958_v19 }
 0x171   : > { %1517 = vtanh.f32 %v678_v62  ;;  %v637_v30 = vmul.f32 0.5, %v1966_v31  ;;  %v635_v25 = vmul.f32 0.5, %v1960_v20  ;;  %v639_v16 = vmul.f32 0.5, %v1968_v32 }
 0x172   : > { %1519 = vtanh.f32 %v673_v0 }
 0x173   : > { %1521 = vtanh.f32 %v677_v1 }
 0x174   : > { %1523 = vtanh.f32 %v675_v3 }
 0x175   : > { %1525 = vtanh.f32 %v679_v4 }
 0x178   : > { %v1512_v5 = vpop.eup %1511 }
 0x179   : > { %v1514_v6 = vpop.eup %1513  ;;  %v688_v7 = vadd.f32 1.0, %v1512_v5 }
 0x17a   : > { %v1516_v8 = vpop.eup %1515  ;;  %v690_v9 = vadd.f32 1.0, %v1514_v6 }
 0x17b   : > { %v1518_v10 = vpop.eup %1517  ;;  %v692_v13 = vadd.f32 1.0, %v1516_v8  ;;  %v696_v27 = vmul.f32 %v688_v7, %v632_v11 }
 0x17c   : > { %v1520_v14 = vpop.eup %1519  ;;  %v694_v21 = vadd.f32 1.0, %v1518_v10  ;;  %v698_v34 = vmul.f32 %v690_v9, %v634_v17 }
 0x17d   : > { %v1522_v22 = vpop.eup %1521  ;;  %v689_v24 = vadd.f32 1.0, %v1520_v14  ;;  %v700_v28 = vmul.f32 %v692_v13, %v636_v12 }
 0x17e   : > { %v1524_v29 = vpop.eup %1523  ;;  %v693_v33 = vadd.f32 1.0, %v1522_v22  ;;  %v702_v35 = vmul.f32 %v694_v21, %v638_v18 }
 0x17f   : > { %v1526_v15 = vpop.eup %1525  ;;  %v691_v26 = vadd.f32 1.0, %v1524_v29  ;;  %v704_v36 = vpack.c.bf16 %v700_v28, %v696_v27  ;;  %v697_v37 = vmul.f32 %v689_v24, %v633_v23 }
 0x180   : > { %v701_v38 = vmul.f32 %v693_v33, %v637_v30  ;;  %v695_v19 = vadd.f32 1.0, %v1526_v15  ;;  %v706_v39 = vpack.c.bf16 %v702_v35, %v698_v34 }
 0x181   : > { %v699_v41 = vmul.f32 %v691_v26, %v635_v25 }
 0x182   : > { %v705_v40 = vpack.c.bf16 %v701_v38, %v697_v37  ;;  %v703_v42 = vmul.f32 %v695_v19, %v639_v16 }
 0x184   : > { %996 = vmatprep.mubr.bf16.mxu0 %v705_v40  ;;  %v707_v31 = vpack.c.bf16 %v703_v42, %v699_v41 }
 0x185   : > { %997 = vmatmul.mubr.bf16.vlgmr.msra.gmra.mrb[4].mxu0 %v704_v36 }
 0x186   : > { %1037 = vmatprep.mubr.bf16.mxu1 %v707_v31 }
 0x187   : > { %1038 = vmatmul.mubr.bf16.vlgmr.msra.gmra.mrb[4].mxu1 %v706_v39 }
 0x258   : > { %v1312_v43 = vpop.f32.mrb[4].mxu0 }
 0x259   : > { %v1313_v20 = vpop.f32.mrb[5].mxu0 }
 0x25a   : > { %v1334_v44 = vpop.f32.mrb[4].mxu1  ;;  %v1314_v32 = vadd.f32 %v1313_v20, %v1312_v43  ;;  %v1315_v45 = vpop.f32.mrb[6].mxu0 }
 0x25b   : > { %v1335_v46 = vpop.f32.mrb[5].mxu1  ;;  %v1316_v47 = vpop.f32.mrb[7].mxu0 }
 0x25c   : > { %v1336_v48 = vadd.f32 %v1335_v46, %v1334_v44  ;;  %v1337_v49 = vpop.f32.mrb[6].mxu1  ;;  %v1317_v50 = vadd.f32 %v1316_v47, %v1315_v45 }
 0x25d   : > { %v1338_v52 = vpop.f32.mrb[7].mxu1 }
 0x25e   : > { %v1040_v53 = vadd.f32 %v1336_v48, %v1314_v32  ;;  %v1339_v54 = vadd.f32 %v1338_v52, %v1337_v49 }
 0x260   : > { %v1074_v55 = vadd.f32 %v1288_v51, %v1040_v53  ;;  %v1043_v56 = vadd.f32 %v1339_v54, %v1317_v50 }
 0x262   : > { %1076 = vst [vmem:[%s313_s9] sm:$0xff] %v1074_v55  ;;  %v1075_v57 = vadd.f32 %v1288_v51, %v1043_v56 }
 0x264   : > { %1077 = vst [vmem:[%s313_s9 + $0x8] sm:$0xff] %v1075_v57 }
 0x265   : > { %1626 = shalt.err (!%p1623_p11)
}
 0x266   : > { %s1627_s28 = scalar_lea.hbm %s2006_s14, 256  ;;  %s1631_s6 = scalar_lea.hbm %s2060_s5, 512 }
 0x267   : > { %p1628_p0 = scmp.ne.s32.totalorder %s2006_s14, %s1627_s28  ;;  %p1632_p6 = scmp.lt.u32.totalorder %s2006_s14, %s2060_s5 }
 0x268   : > { %p1633_p7 = scmp.lt.u32.totalorder %s1631_s6, %s1627_s28  ;;  %p1635_p8 = scmp.lt.u32.totalorder %s1627_s28, %s2006_s14 }
 0x269   : > { %p1629_p4 = pnand %p1628_p0, %p2077_p12 }
 0x26a   : > { %p1634_p2 = por %p1633_p7, %p1632_p6 }
 0x26b   : > { %p1630_p13 = pneg %p1629_p4 }
 0x26c   : > { %p1636_p1 = por %p1635_p8, %p1634_p2 }
 0x26e   : > { %p1637_p10 = pnand %p1636_p1, %p1630_p13 }
 0x270   : > { %1640 = shalt.err (!%p1637_p10)
}
 0x271   : > { %s1710_s16 = smov 128   ;;  %s1711_s7 = smov 8  }
 0x272   : > { %1350 = dma.vmem_to_hbm [thread:$0]  (%p2077_p12), %s2001_s11, 256, %s2006_s14, %s1079_s27, %s1710_s16, %s1710_s16, %s1711_s7  }
 0x273 PF: > { %s1107_s15 = sand.u32 1, %s1679_s18   ;;  %p2078_p3 = scmp.ne.s32.totalorder %s2069_s29, 0 }
 0x274   : > { %p2079_p5 = scmp.ge.s32.totalorder %s1699_s23, 2  ;;  %s1108_s21 = scalar_lea.sflag [#allocation5], %s1107_s15 }
 0x276   : > { %p1364_p9 = pnand %p2079_p5, %p2078_p3 }
 0x278   : > { %1674 = dma.done.wait (!%p1364_p9), %s1108_s21, 256  }
 0x279   : > { %1676 = vsyncadd (!%p1364_p9), %s1108_s21, 4294967040  ;;  %s22_s23 = sadd.s32 1, %s1699_s23   ;;  %s2080_s18 = smov %s1683_s19 }
 0x27a   : > { %p19_p11 = scmp.ge.s32.totalorder %s22_s23, 4   ;;  %s2081_s19 = smov %s1687_s20 }
 0x27b   : > { %s2082_s20 = smov %s1887_s17  ;;  %s2083_s21 = smov %s1695_s22 }
 0x27c   : > { %s2084_s22 = smov %s2086_s12  ;;  %21 = sbr.rel (!%p19_p11) target bundleno = 7 (0x7), region = 110 }
 0x283   :  { %1113 = vsyncpa [#allocation4], 1 }
 0x284   :  { %1115 = vsyncpa [#allocation4 + $0x1], 1 }
 0x285   :  { %1116 = vsyncpa [#allocation7], 1 }
 0x286   :  { %1117 = vsyncpa [#allocation5], 1 }
 0x287   :  { %1119 = vsyncpa [#allocation5 + $0x1], 1 }

</bundles_post_ra>
